<compile_context>
chip_gen: v7x
topology: tpu7x:2x2x1
jax: 0.10.0
libtpu: 0.0.40
codegen_flags: <defaults>
</compile_context>

<pallas_src>
import jax
import jax.numpy as jnp
from jax.experimental import pallas as pl
from jax.experimental.pallas import tpu as pltpu

_LANE = 128
_MIB = 1024 * 1024


def _round_up(x: int, m: int) -> int:
    return ((x + m - 1) // m) * m


def _vmem_cap_bytes() -> int:
    """Generation-aware usable-VMEM cap (~85% of physical, leaves headroom)."""
    try:
        info = pltpu.get_tpu_info()
        cap = int(getattr(info, "vmem_capacity_bytes", 0)) or 64 * _MIB
    except Exception:
        cap = 64 * _MIB  # conservative (v7x-sized) default
    return int(cap * 0.85)


def _choose_seq_tiling(S: int, B: int):
    """Lane-dense (128-multiple) seq tiles; keep >=4 grid steps for megacore."""
    s128 = _round_up(S, _LANE)
    ts = min(s128, 512)
    # v7x has 2 TensorCores; make sure the parallel grid has work to split.
    while ts > 256 and B * ((s128 + ts - 1) // ts) < 4:
        ts //= 2
    s_pad = _round_up(s128, ts)  # fully tiled -> no partial seq blocks
    return ts, s_pad


def _ffn_resident_kernel(x_ref, w1_ref, b1_ref, w2_ref, b2_ref, o_ref):
    # x_ref : [1, H, TS]   (features on sublanes, seq on lanes)
    # w1_ref: [2H, H]   b1_ref: [2H, 1]
    # w2_ref: [H, 2H]   b2_ref: [H, 1]
    # o_ref : [1, H, TS]
    x = x_ref[0, :, :]                                               # [H, TS]
    h = jnp.dot(w1_ref[...], x,
                preferred_element_type=jnp.float32) + b1_ref[...]    # [2H, TS] f32
    y = jnp.dot(w2_ref[...], h.astype(w2_ref.dtype),
                preferred_element_type=jnp.float32) + b2_ref[...]    # [H, TS] f32
    o_ref[0, :, :] = y.astype(o_ref.dtype)


def _ffn_chunked_kernel(x_ref, w1_ref, b1_ref, w2_ref, b2_ref, o_ref, acc_ref):
    # Grid axis 2 walks chunks of the 2H dimension (marked "arbitrary").
    # x_ref : [1, H, TS]          w1_ref: [CH, H]   b1_ref: [CH, 1]
    # w2_ref: [H, CH]             b2_ref: [H, 1]
    # o_ref : [1, H, TS]          acc_ref: [H, TS] f32 scratch
    c = pl.program_id(2)

    @pl.when(c == 0)
    def _init():
        # Fold b2 into the accumulator init (only one padded bias tile live).
        acc_ref[...] = jnp.broadcast_to(
            b2_ref[...].astype(jnp.float32), acc_ref.shape)

    x = x_ref[0, :, :]                                               # [H, TS]
    h = jnp.dot(w1_ref[...], x,
                preferred_element_type=jnp.float32) + b1_ref[...]    # [CH, TS] f32
    acc_ref[...] += jnp.dot(w2_ref[...], h.astype(w2_ref.dtype),
                            preferred_element_type=jnp.float32)      # [H, TS] f32

    @pl.when(c == pl.num_programs(2) - 1)
    def _store():
        o_ref[0, :, :] = acc_ref[...].astype(o_ref.dtype)


def positionwise_ffn(x, w1, b1, w2, b2, *, chunk_2h=None):
    """Forward pass of PositionwiseFeedforwardLayer.

    x : [B, hidden, seq]
    w1: [2*hidden, hidden]   (nn.Linear(hidden, 2*hidden).weight layout)
    b1: [2*hidden]
    w2: [hidden, 2*hidden]   (nn.Linear(2*hidden, hidden).weight layout)
    b2: [hidden]
    chunk_2h: optional chunk size over the 2*hidden dimension (forces the
      streaming/accumulate path; must divide 2*hidden and be a multiple of 8).
    returns [B, hidden, seq]
    """
    B, H, S = x.shape
    H2 = 2 * H
    assert w1.shape == (H2, H) and w2.shape == (H, H2)
    assert b1.shape == (H2,) and b2.shape == (H,)

    dt = x.dtype
    dsize = jnp.dtype(dt).itemsize

    TS, S_pad = _choose_seq_tiling(S, B)
    if S_pad != S:
        # One cheap XLA pad keeps every load/store lane-dense.
        x = jnp.pad(x, ((0, 0), (0, 0), (0, S_pad - S)))

    # Biases as column vectors so they broadcast along the seq (lane) axis.
    b1c = b1.reshape(H2, 1)
    b2c = b2.reshape(H, 1)

    cap = _vmem_cap_bytes()

    # VMEM footprint estimates (biases counted at their lane-padded size).
    xio = 2 * 2 * H * TS * dsize            # x + out tiles, double-buffered
    inter = (H2 + H) * TS * 4               # f32 intermediates h and y
    res_w = 2 * H2 * H * dsize              # W1 + W2, single-buffered
    res_b = (H2 + H) * _LANE * dsize        # lane-padded bias columns
    resident_need = xio + inter + res_w + res_b

    use_chunked = chunk_2h is not None
    ch = chunk_2h
    if not use_chunked and resident_need > cap and H2 % 256 == 0:
        # Weights don't fit resident: pick the largest 256-multiple divisor of
        # 2H whose per-chunk working set fits the budget.
        fixed = xio + H * TS * 4 + H * _LANE * dsize
        per_row = 2 * 2 * H * dsize + 2 * _LANE * dsize + 4 * TS
        want = max(256, int((cap - fixed) // per_row)) if cap > fixed else 256
        best = 256
        for cand in range(256, min(want, H2) + 1, 256):
            if H2 % cand == 0:
                best = cand
        ch = best
        use_chunked = True
    # TODO(synk): if 2H is not a multiple of 256 and the weights still do not
    # fit resident, pad the 2H dimension of W1/b1/W2 externally before calling.

    flops = 2 * 2 * B * S_pad * H * H2  # two matmuls
    # Weights/biases are read once total (VMEM-resident), not per grid step.
    bytes_accessed = (2 * B * H * S_pad + 2 * H2 * H + H2 + H) * dsize

    def _call(single_buffer_resident: bool):
        pm = (dict(pipeline_mode=pl.Buffered(1))
              if single_buffer_resident else {})

        if not use_chunked:
            grid = (B, S_pad // TS)
            need = resident_need if single_buffer_resident else (
                resident_need + res_w + res_b)
            in_specs = [
                pl.BlockSpec((1, H, TS), lambda b, s: (b, 0, s)),   # x (streamed)
                pl.BlockSpec((H2, H), lambda b, s: (0, 0), **pm),   # w1 (resident)
                pl.BlockSpec((H2, 1), lambda b, s: (0, 0), **pm),   # b1 (resident)
                pl.BlockSpec((H, H2), lambda b, s: (0, 0), **pm),   # w2 (resident)
                pl.BlockSpec((H, 1), lambda b, s: (0, 0), **pm),    # b2 (resident)
            ]
            out_specs = pl.BlockSpec((1, H, TS), lambda b, s: (b, 0, s))
            scratch = []
            kern = _ffn_resident_kernel
            dims = ("parallel", "parallel")
        else:
            assert H2 % ch == 0 and ch % 8 == 0, (
                "chunk_2h must divide 2*hidden and be a multiple of 8")
            n_chunks = H2 // ch
            grid = (B, S_pad // TS, n_chunks)
            need = (xio + H * TS * 4 + ch * TS * 4
                    + 2 * 2 * ch * H * dsize
                    + 2 * ch * _LANE * dsize + H * _LANE * dsize)
            in_specs = [
                pl.BlockSpec((1, H, TS), lambda b, s, c: (b, 0, s)),  # x
                pl.BlockSpec((ch, H), lambda b, s, c: (c, 0)),        # w1 chunk
                pl.BlockSpec((ch, 1), lambda b, s, c: (c, 0)),        # b1 chunk
                pl.BlockSpec((H, ch), lambda b, s, c: (0, c)),        # w2 chunk
                pl.BlockSpec((H, 1), lambda b, s, c: (0, 0), **pm),   # b2
            ]
            out_specs = pl.BlockSpec((1, H, TS), lambda b, s, c: (b, 0, s))
            scratch = [pltpu.VMEM((H, TS), jnp.float32)]
            kern = _ffn_chunked_kernel
            dims = ("parallel", "parallel", "arbitrary")

        vmem_limit = int(min(cap, max(int(need * 1.25) + 2 * _MIB, 32 * _MIB)))

        return pl.pallas_call(
            kern,
            out_shape=jax.ShapeDtypeStruct((B, H, S_pad), dt),
            grid=grid,
            in_specs=in_specs,
            out_specs=out_specs,
            scratch_shapes=scratch,
            compiler_params=pltpu.CompilerParams(
                dimension_semantics=dims,
                vmem_limit_bytes=vmem_limit,
            ),
            cost_estimate=pl.CostEstimate(
                flops=flops, transcendentals=0, bytes_accessed=bytes_accessed),
        )(x, w1, b1c, w2, b2c)

    try:
        out = _call(True)
    except Exception:
        # pl.Buffered(1) (single-buffered resident operands) not supported by
        # this jax build -> fall back to default double-buffering.
        out = _call(False)

    if S_pad != S:
        out = out[:, :, :S]
    return out


if __name__ == "__main__":
    key = jax.random.PRNGKey(0)
    B, H, S = 2, 32, 8  # batch, hidden_size, seq_len

    k_x, k_w1, k_b1, k_w2, k_b2 = jax.random.split(key, 5)
    x = jax.random.normal(k_x, (B, H, S), dtype=jnp.float32)

    # nn.Linear(H, 2H): weight (2H, H), bias (2H,)
    bound1 = 1.0 / (H ** 0.5)
    w1 = jax.random.uniform(k_w1, (2 * H, H), jnp.float32, -bound1, bound1)
    b1 = jax.random.uniform(k_b1, (2 * H,), jnp.float32, -bound1, bound1)

    # nn.Linear(2H, H): weight (H, 2H), bias (H,)
    bound2 = 1.0 / ((2 * H) ** 0.5)
    w2 = jax.random.uniform(k_w2, (H, 2 * H), jnp.float32, -bound2, bound2)
    b2 = jax.random.uniform(k_b2, (H,), jnp.float32, -bound2, bound2)

    def reference(x, w1, b1, w2, b2):
        # Mirrors the PyTorch module exactly.
        x_t = jnp.transpose(x, (0, 2, 1))            # [B, S, H]
        y = (x_t @ w1.T + b1) @ w2.T + b2            # [B, S, H]
        return jnp.transpose(y, (0, 2, 1))           # [B, H, S]

    out = jax.block_until_ready(positionwise_ffn(x, w1, b1, w2, b2))
    ref = reference(x, w1, b1, w2, b2)
    assert out.shape == (B, H, S)
    assert jnp.allclose(out, ref, atol=1e-5, rtol=1e-5)

    # Also exercise the 2H-chunked accumulate path (auto-selected for large
    # hidden sizes) on a small, MXU-aligned shape with an odd seq length.
    B2, Hc, S2 = 1, 256, 40
    k_x2, k_w1b, k_b1b, k_w2b, k_b2b = jax.random.split(jax.random.PRNGKey(1), 5)
    x2 = jax.random.normal(k_x2, (B2, Hc, S2), dtype=jnp.float32)
    w1b = jax.random.uniform(k_w1b, (2 * Hc, Hc), jnp.float32, -0.05, 0.05)
    b1b = jax.random.uniform(k_b1b, (2 * Hc,), jnp.float32, -0.05, 0.05)
    w2b = jax.random.uniform(k_w2b, (Hc, 2 * Hc), jnp.float32, -0.05, 0.05)
    b2b = jax.random.uniform(k_b2b, (Hc,), jnp.float32, -0.05, 0.05)

    out2 = jax.block_until_ready(
        positionwise_ffn(x2, w1b, b1b, w2b, b2b, chunk_2h=256))
    ref2 = reference(x2, w1b, b1b, w2b, b2b)
    assert out2.shape == (B2, Hc, S2)
    assert jnp.allclose(out2, ref2, atol=1e-4, rtol=1e-4)

    print("KERNEL_OK")
</pallas_src>

<mosaic_0001>
module attributes {stable_mosaic.version = 11 : i64} {
  func.func @_ffn_resident_kernel(%arg0: i32, %arg1: i32, %arg2: memref<1x32x128xf32, #tpu.memory_space<vmem>>, %arg3: memref<64x32xf32, #tpu.memory_space<vmem>>, %arg4: memref<64x1xf32, #tpu.memory_space<vmem>>, %arg5: memref<32x64xf32, #tpu.memory_space<vmem>>, %arg6: memref<32x1xf32, #tpu.memory_space<vmem>>, %arg7: memref<1x32x128xf32, #tpu.memory_space<vmem>>) attributes {dimension_semantics = [#tpu.dimension_semantics<parallel>, #tpu.dimension_semantics<parallel>], iteration_bounds = array<i64: 2, 1>, scalar_prefetch = 0 : i64, scratch_operands = 0 : i64, tpu.core_type = #tpu.core_type<tc>, window_params = [{transform_indices = @transform_0, window_bounds = array<i64: 1, 32, 128>}, {pipeline_mode = #tpu.pipeline_mode<synchronous>, transform_indices = @transform_1, window_bounds = array<i64: 64, 32>}, {pipeline_mode = #tpu.pipeline_mode<synchronous>, transform_indices = @transform_2, window_bounds = array<i64: 64, 1>}, {pipeline_mode = #tpu.pipeline_mode<synchronous>, transform_indices = @transform_3, window_bounds = array<i64: 32, 64>}, {pipeline_mode = #tpu.pipeline_mode<synchronous>, transform_indices = @transform_4, window_bounds = array<i64: 32, 1>}, {transform_indices = @transform_5, window_bounds = array<i64: 1, 32, 128>}]} {
    %c0 = arith.constant 0 : index
    %c0_0 = arith.constant 0 : index
    %c0_1 = arith.constant 0 : index
    %0 = vector.load %arg2[%c0, %c0_0, %c0_1] : memref<1x32x128xf32, #tpu.memory_space<vmem>>, vector<1x32x128xf32>
    %1 = vector.shape_cast %0 : vector<1x32x128xf32> to vector<32x128xf32>
    %c0_2 = arith.constant 0 : index
    %c0_3 = arith.constant 0 : index
    %2 = vector.load %arg3[%c0_2, %c0_3] : memref<64x32xf32, #tpu.memory_space<vmem>>, vector<64x32xf32>
    %cst = arith.constant dense<0.000000e+00> : vector<64x128xf32>
    %3 = tpu.matmul %2, %1, %cst {dimension_numbers = #tpu.dot_dimension_numbers<[1], [0], [0], [1], [0, 0, 1, 1], [], []>} : vector<64x32xf32>, vector<32x128xf32>, vector<64x128xf32> -> vector<64x128xf32>
    %c0_4 = arith.constant 0 : index
    %c0_5 = arith.constant 0 : index
    %4 = vector.load %arg4[%c0_4, %c0_5] : memref<64x1xf32, #tpu.memory_space<vmem>>, vector<64x1xf32>
    %5 = vector.broadcast %4 : vector<64x1xf32> to vector<64x128xf32>
    %6 = arith.addf %3, %5 : vector<64x128xf32>
    %c0_6 = arith.constant 0 : index
    %c0_7 = arith.constant 0 : index
    %7 = vector.load %arg5[%c0_6, %c0_7] : memref<32x64xf32, #tpu.memory_space<vmem>>, vector<32x64xf32>
    %cst_8 = arith.constant dense<0.000000e+00> : vector<32x128xf32>
    %8 = tpu.matmul %7, %6, %cst_8 {dimension_numbers = #tpu.dot_dimension_numbers<[1], [0], [0], [1], [0, 0, 1, 1], [], []>} : vector<32x64xf32>, vector<64x128xf32>, vector<32x128xf32> -> vector<32x128xf32>
    %c0_9 = arith.constant 0 : index
    %c0_10 = arith.constant 0 : index
    %9 = vector.load %arg6[%c0_9, %c0_10] : memref<32x1xf32, #tpu.memory_space<vmem>>, vector<32x1xf32>
    %10 = vector.broadcast %9 : vector<32x1xf32> to vector<32x128xf32>
    %11 = arith.addf %8, %10 : vector<32x128xf32>
    %c0_11 = arith.constant 0 : index
    %c0_12 = arith.constant 0 : index
    %c0_13 = arith.constant 0 : index
    %12 = vector.load %arg7[%c0_11, %c0_12, %c0_13] : memref<1x32x128xf32, #tpu.memory_space<vmem>>, vector<1x32x128xf32>
    %13 = vector.shape_cast %12 : vector<1x32x128xf32> to vector<32x128xf32>
    %14 = vector.shape_cast %11 : vector<32x128xf32> to vector<1x32x128xf32>
    tpu.vector_store %arg7[%c0_11, %c0_12, %c0_13], %14 {strides = array<i32>} : memref<1x32x128xf32, #tpu.memory_space<vmem>>, vector<1x32x128xf32>,
    return
  }
  func.func @transform_0(%arg0: i32, %arg1: i32) -> (i32, i32, i32) {
    %c0_i32 = arith.constant 0 : i32
    %c0_i32_0 = arith.constant 0 : i32
    return %arg0, %c0_i32, %arg1 : i32, i32, i32
  }
  func.func @transform_1(%arg0: i32, %arg1: i32) -> (i32, i32) {
    %c0_i32 = arith.constant 0 : i32
    %c0_i32_0 = arith.constant 0 : i32
    %c0_i32_1 = arith.constant 0 : i32
    return %c0_i32, %c0_i32_0 : i32, i32
  }
  func.func @transform_2(%arg0: i32, %arg1: i32) -> (i32, i32) {
    %c0_i32 = arith.constant 0 : i32
    %c0_i32_0 = arith.constant 0 : i32
    %c0_i32_1 = arith.constant 0 : i32
    return %c0_i32, %c0_i32_0 : i32, i32
  }
  func.func @transform_3(%arg0: i32, %arg1: i32) -> (i32, i32) {
    %c0_i32 = arith.constant 0 : i32
    %c0_i32_0 = arith.constant 0 : i32
    %c0_i32_1 = arith.constant 0 : i32
    return %c0_i32, %c0_i32_0 : i32, i32
  }
  func.func @transform_4(%arg0: i32, %arg1: i32) -> (i32, i32) {
    %c0_i32 = arith.constant 0 : i32
    %c0_i32_0 = arith.constant 0 : i32
    %c0_i32_1 = arith.constant 0 : i32
    return %c0_i32, %c0_i32_0 : i32, i32
  }
  func.func @transform_5(%arg0: i32, %arg1: i32) -> (i32, i32, i32) {
    %c0_i32 = arith.constant 0 : i32
    %c0_i32_0 = arith.constant 0 : i32
    return %arg0, %c0_i32, %arg1 : i32, i32, i32
  }
}

module attributes {stable_mosaic.version = 11 : i64} {
  func.func @_ffn_resident_kernel(%arg0: i32, %arg1: i32, %arg2: memref<1x32x128xf32, #tpu.memory_space<vmem>>, %arg3: memref<64x32xf32, #tpu.memory_space<vmem>>, %arg4: memref<64x1xf32, #tpu.memory_space<vmem>>, %arg5: memref<32x64xf32, #tpu.memory_space<vmem>>, %arg6: memref<32x1xf32, #tpu.memory_space<vmem>>, %arg7: memref<1x32x128xf32, #tpu.memory_space<vmem>>) attributes {dimension_semantics = [#tpu.dimension_semantics<parallel>, #tpu.dimension_semantics<parallel>], iteration_bounds = array<i64: 2, 1>, scalar_prefetch = 0 : i64, scratch_operands = 0 : i64, tpu.core_type = #tpu.core_type<tc>, window_params = [{transform_indices = @transform_0, window_bounds = array<i64: 1, 32, 128>}, {pipeline_mode = #tpu.pipeline_mode<synchronous>, transform_indices = @transform_1, window_bounds = array<i64: 64, 32>}, {pipeline_mode = #tpu.pipeline_mode<synchronous>, transform_indices = @transform_2, window_bounds = array<i64: 64, 1>}, {pipeline_mode = #tpu.pipeline_mode<synchronous>, transform_indices = @transform_3, window_bounds = array<i64: 32, 64>}, {pipeline_mode = #tpu.pipeline_mode<synchronous>, transform_indices = @transform_4, window_bounds = array<i64: 32, 1>}, {transform_indices = @transform_5, window_bounds = array<i64: 1, 32, 128>}]} {
    %c0 = arith.constant 0 : index
    %c0_0 = arith.constant 0 : index
    %c0_1 = arith.constant 0 : index
    %0 = vector.load %arg2[%c0, %c0_0, %c0_1] : memref<1x32x128xf32, #tpu.memory_space<vmem>>, vector<1x32x128xf32>
    %1 = vector.shape_cast %0 : vector<1x32x128xf32> to vector<32x128xf32>
    %c0_2 = arith.constant 0 : index
    %c0_3 = arith.constant 0 : index
    %2 = vector.load %arg3[%c0_2, %c0_3] : memref<64x32xf32, #tpu.memory_space<vmem>>, vector<64x32xf32>
    %cst = arith.constant dense<0.000000e+00> : vector<64x128xf32>
    %3 = tpu.matmul %2, %1, %cst {dimension_numbers = #tpu.dot_dimension_numbers<[1], [0], [0], [1], [0, 0, 1, 1], [], []>} : vector<64x32xf32>, vector<32x128xf32>, vector<64x128xf32> -> vector<64x128xf32>
    %c0_4 = arith.constant 0 : index
    %c0_5 = arith.constant 0 : index
    %4 = vector.load %arg4[%c0_4, %c0_5] : memref<64x1xf32, #tpu.memory_space<vmem>>, vector<64x1xf32>
    %5 = vector.broadcast %4 : vector<64x1xf32> to vector<64x128xf32>
    %6 = arith.addf %3, %5 : vector<64x128xf32>
    %c0_6 = arith.constant 0 : index
    %c0_7 = arith.constant 0 : index
    %7 = vector.load %arg5[%c0_6, %c0_7] : memref<32x64xf32, #tpu.memory_space<vmem>>, vector<32x64xf32>
    %cst_8 = arith.constant dense<0.000000e+00> : vector<32x128xf32>
    %8 = tpu.matmul %7, %6, %cst_8 {dimension_numbers = #tpu.dot_dimension_numbers<[1], [0], [0], [1], [0, 0, 1, 1], [], []>} : vector<32x64xf32>, vector<64x128xf32>, vector<32x128xf32> -> vector<32x128xf32>
    %c0_9 = arith.constant 0 : index
    %c0_10 = arith.constant 0 : index
    %9 = vector.load %arg6[%c0_9, %c0_10] : memref<32x1xf32, #tpu.memory_space<vmem>>, vector<32x1xf32>
    %10 = vector.broadcast %9 : vector<32x1xf32> to vector<32x128xf32>
    %11 = arith.addf %8, %10 : vector<32x128xf32>
    %c0_11 = arith.constant 0 : index
    %c0_12 = arith.constant 0 : index
    %c0_13 = arith.constant 0 : index
    %12 = vector.load %arg7[%c0_11, %c0_12, %c0_13] : memref<1x32x128xf32, #tpu.memory_space<vmem>>, vector<1x32x128xf32>
    %13 = vector.shape_cast %12 : vector<1x32x128xf32> to vector<32x128xf32>
    %14 = vector.shape_cast %11 : vector<32x128xf32> to vector<1x32x128xf32>
    tpu.vector_store %arg7[%c0_11, %c0_12, %c0_13], %14 {strides = array<i32>} : memref<1x32x128xf32, #tpu.memory_space<vmem>>, vector<1x32x128xf32>,
    return
  }
  func.func @transform_0(%arg0: i32, %arg1: i32) -> (i32, i32, i32) {
    %c0_i32 = arith.constant 0 : i32
    %c0_i32_0 = arith.constant 0 : i32
    return %arg0, %c0_i32, %arg1 : i32, i32, i32
  }
  func.func @transform_1(%arg0: i32, %arg1: i32) -> (i32, i32) {
    %c0_i32 = arith.constant 0 : i32
    %c0_i32_0 = arith.constant 0 : i32
    %c0_i32_1 = arith.constant 0 : i32
    return %c0_i32, %c0_i32_0 : i32, i32
  }
  func.func @transform_2(%arg0: i32, %arg1: i32) -> (i32, i32) {
    %c0_i32 = arith.constant 0 : i32
    %c0_i32_0 = arith.constant 0 : i32
    %c0_i32_1 = arith.constant 0 : i32
    return %c0_i32, %c0_i32_0 : i32, i32
  }
  func.func @transform_3(%arg0: i32, %arg1: i32) -> (i32, i32) {
    %c0_i32 = arith.constant 0 : i32
    %c0_i32_0 = arith.constant 0 : i32
    %c0_i32_1 = arith.constant 0 : i32
    return %c0_i32, %c0_i32_0 : i32, i32
  }
  func.func @transform_4(%arg0: i32, %arg1: i32) -> (i32, i32) {
    %c0_i32 = arith.constant 0 : i32
    %c0_i32_0 = arith.constant 0 : i32
    %c0_i32_1 = arith.constant 0 : i32
    return %c0_i32, %c0_i32_0 : i32, i32
  }
  func.func @transform_5(%arg0: i32, %arg1: i32) -> (i32, i32, i32) {
    %c0_i32 = arith.constant 0 : i32
    %c0_i32_0 = arith.constant 0 : i32
    return %arg0, %c0_i32, %arg1 : i32, i32, i32
  }
}

</mosaic_0001>

<bundles_post_ra>
// kernel: tpu_custom_call.1
= control target key start
LH: loop header
LB: loop body
LE: loop exit
PB: predicated region body
PF: predicated region fallthrough
CT: control target
= control target key end

     0   :  { %10 = vsyncpa [#allocation3], 0  ;;  %s1151_s0 = inlined_call_operand.vmem [shape: f32[2,32,128], index: 0, kind: input, shape index: {}]   ;;  %s1152_s1 = inlined_call_operand.vmem [shape: f32[64,32], index: 1, kind: input, shape index: {}]   ;;  %s1153_s2 = inlined_call_operand.vmem [shape: f32[64,1], index: 2, kind: input, shape index: {}]   ;;  %s1154_s3 = inlined_call_operand.vmem [shape: f32[32,64], index: 3, kind: input, shape index: {}]   ;;  %s1155_s4 = inlined_call_operand.vmem [shape: f32[32,1], index: 4, kind: input, shape index: {}]   ;;  %s1156_s5 = inlined_call_operand.hbm [shape: f32[2,32,128], index: 5, kind: output, shape index: {}]  }
   0x1   :  { %12 = vsyncpa [#allocation3 + $0x1], 0  ;;  %s952_s18 = smov 0   ;;  %s954_s19 = smov 0  }
   0x2   :  { %s956_s20 = smov 0   ;;  %s958_s21 = smov 0  }
   0x3   :  { %s960_s22 = smov 0   ;;  %s962_s23 = smov 0  }
   0x4 LB: > { %s661_s24 = sadd.s32 4294967295, %s916_s23   ;;  %s662_s25 = sadd.s32 4294967294, %s916_s23   ;;  %s916_s23 = sphi %s962_s23, %s18_s23   ;;  %s912_s22 = sphi %s960_s22, %s1163_s22   ;;  %s908_s21 = sphi %s958_s21, %s1162_s21   ;;  %s904_s20 = sphi %s956_s20, %s1161_s20   ;;  %s900_s19 = sphi %s954_s19, %s1160_s19   ;;  %s896_s18 = sphi %s952_s18, %s1159_s18  }
   0x5   : > { %s30_s26 = sadd.s32 1, %s912_s22  ;;  %s151_s27 = sadd.s32 1, %s904_s20 }
   0x6   : > { %p32_p0 = scmp.ge.s32.totalorder %s30_s26, 2  ;;  %p161_p1 = scmp.ne.s32.totalorder %s904_s20, %s900_s19 }
   0x7   : > { %p162_p2 = scmp.eq.s32.totalorder %s661_s24, 1  ;;  %p167_p3 = scmp.ne.s32.totalorder %s900_s19, %s896_s18 }
   0x8   : > { %s1165_s26 = smov (%p32_p0, %s30_s26), 0  ;;  %p168_p5 = scmp.eq.s32.totalorder %s662_s25, 1 }
   0x9   : > { %p992_p4 = por %p162_p2, %p161_p1  ;;  %s146_s29 = ssub.s32 %s912_s22, %s1165_s26 }
   0xa   : > { %p665_p6 = scmp.ge.s32.totalorder %s916_s23, 1  ;;  %p149_p7 = scmp.eq.s32.totalorder %s146_s29, 0 }
   0xb   : > { %p999_p8 = por %p168_p5, %p167_p3  ;;  %p209_p9 = scmp.lt.s32.totalorder %s916_s23, 3 }
   0xc   : > { %s1005_s6 = scalar_select %p149_p7, %s904_s20, %s151_s27  }
   0xd   : > { %p210_p10 = pnand %p665_p6, %p209_p9 }
   0xe   : > { %p240_p11 = scmp.lt.s32.totalorder (!%p210_p10), %s908_s21, 1  ;;  %v252_v0 = vld [vmem:[%s1152_s1] sm:$0xff] (!%p210_p10)  ;;  %vm308_vm0 = vcmask (!%p210_p10), 261120   ;;  %v918_v1 = vmov (!%p210_p10), 0   ;;  %v262_v3 = vld [vmem:[%s1153_s2 + $0x10] sm:$0xff] (!%p210_p10)  ;;  %v261_v4 = vld [vmem:[%s1153_s2 + $0x8] sm:$0xff] (!%p210_p10) }
   0xf   : > { %213 = sbr.rel (%p210_p10) target bundleno = 504 (0x1f8), region = 40  ;;  %720 = vmatprep.mubr.msk.f32.mxu0 (!%p210_p10), %vm308_vm0, %v252_v0  ;;  %836 = vset.pattern.permute.xlu0 (!%p210_p10), %v918_v1  ;;  %v260_v2 = vld [vmem:[%s1153_s2] sm:$0xff] (!%p210_p10)  ;;  %v263_v5 = vld [vmem:[%s1153_s2 + $0x18] sm:$0xff] (!%p210_p10)  ;;  %v265_v13 = vld [vmem:[%s1153_s2 + $0x28] sm:$0xff] (!%p210_p10)  ;;  %vm466_vm1 = vcmask (!%p210_p10), 523264   ;;  %s237_s15 = sand.u32 (!%p210_p10), 1, %s900_s19  }
  0x10   : > { %837 = vset.pattern.permute.xlu1 (!%p210_p10), %v918_v1  ;;  %270 = vperm.xlu0 (!%p210_p10), %836, %v260_v2   ;;  %v264_v12 = vld [vmem:[%s1153_s2 + $0x20] sm:$0xff] (!%p210_p10)  ;;  %v266_v14 = vld [vmem:[%s1153_s2 + $0x30] sm:$0xff] (!%p210_p10)  ;;  %v267_v15 = vld [vmem:[%s1153_s2 + $0x38] sm:$0xff] (!%p210_p10)  ;;  %s666_s16 = sshll.u32 (!%p210_p10), %s237_s15, 5 }
  0x11   : > { %280 = vperm.xlu1 (!%p210_p10), %837, %v262_v3   ;;  %v253_v16 = vld [vmem:[%s1152_s1 + $0x8] sm:$0xff] (!%p210_p10)  ;;  %v254_v17 = vld [vmem:[%s1152_s1 + $0x10] sm:$0xff] (!%p210_p10)  ;;  %v442_v18 = vld [vmem:[%s1155_s4] sm:$0xff] (!%p210_p10)  ;;  %s239_s17 = scalar_lea.vmem (!%p210_p10), [#allocation2], %s666_s16 }
  0x12   : > { %v443_v19 = vld [vmem:[%s1155_s4 + $0x8] sm:$0xff] (!%p210_p10)  ;;  %v255_v20 = vld [vmem:[%s1152_s1 + $0x18] sm:$0xff] (!%p210_p10)  ;;  %v256_v21 = vld [vmem:[%s1152_s1 + $0x20] sm:$0xff] (!%p210_p10)  ;;  %s583_s24 = sshll.u32 (!%p210_p10), %s239_s17, 4  ;;  %s1098_s24 = int_to_ptr.vmem [resolvable:$true] %s583_s24 }
  0x13   : > { %v444_v22 = vld [vmem:[%s1155_s4 + $0x10] sm:$0xff] (!%p210_p10)  ;;  %v445_v23 = vld [vmem:[%s1155_s4 + $0x18] sm:$0xff] (!%p210_p10)  ;;  %v257_v24 = vld [vmem:[%s1152_s1 + $0x28] sm:$0xff] (!%p210_p10)  ;;  %s838_s8 = scalar_lea.vmem (!%p210_p10), %s1098_s24, 512 }
  0x14   : > { %275 = vperm.xlu0 (!%p210_p10), %836, %v261_v4   ;;  %v258_v25 = vld [vmem:[%s1152_s1 + $0x30] sm:$0xff] (!%p210_p10)  ;;  %v259_v26 = vld [vmem:[%s1152_s1 + $0x38] sm:$0xff] (!%p210_p10)  ;;  %v438_v27 = vld [vmem:[%s1154_s3] sm:$0xff] (!%p210_p10)  ;;  %p839_p12 = scmp.ne.s32.totalorder (!%p210_p10), %s1098_s24, %s838_s8 }
  0x15   : > { %285 = vperm.xlu1 (!%p210_p10), %837, %v263_v5   ;;  %748 = vmatprep.mubr.msk.f32.mxu1 (!%p210_p10), %vm466_vm1, %v438_v27  ;;  %v439_v56 = vld [vmem:[%s1154_s3 + $0x8] sm:$0xff] (!%p210_p10)  ;;  %v440_v57 = vld [vmem:[%s1154_s3 + $0x10] sm:$0xff] (!%p210_p10)  ;;  %v441_v58 = vld [vmem:[%s1154_s3 + $0x18] sm:$0xff] (!%p210_p10) }
  0x16   : > { %s241_s9 = scalar_select %p240_p11, %s908_s21, 1 }
  0x17   : > { %p840_p13 = pnand %p839_p12, %p992_p4 }
  0x18   : > { %s686_s14 = sshll.u32 %s241_s9, 5  ;;  %290 = vperm.xlu0 %836, %v264_v12   ;;  %s919_s9 = smov [#allocation2]  }
  0x19   : > { %s247_s25 = scalar_lea.vmem %s1151_s0, %s686_s14  ;;  %295 = vperm.xlu1 %837, %v265_v13   ;;  %p841_p0 = pneg %p840_p13 }
  0x1a   : > { %v248_v6 = vld [vmem:[%s247_s25] sm:$0xff]  ;;  %v249_v7 = vld [vmem:[%s247_s25 + $0x8] sm:$0xff]  ;;  %v250_v8 = vld [vmem:[%s247_s25 + $0x10] sm:$0xff]  ;;  %s842_s10 = sshll.u32 %s919_s9, 4  ;;  %s843_s10 = int_to_ptr.vmem [resolvable:$false] %s842_s10 }
  0x1b   : > { %v754_v9 = vpack.c.bf16 %v249_v7, %v248_v6  ;;  %v251_v10 = vld [vmem:[%s247_s25 + $0x18] sm:$0xff]  ;;  %s687_s25 = sshll.u32 %s908_s21, 9  ;;  %s1105_s21 = scalar_lea.sflag [#allocation3], %s237_s15 }
  0x1c   : > { %v758_v11 = vpack.c.bf16 %v251_v10, %v250_v8  ;;  %300 = vperm.xlu0 %836, %v266_v14   ;;  %s1103_s7 = scalar_lea.hbm %s1156_s5, %s687_s25  ;;  %s844_s11 = scalar_lea.vmem %s843_s10, 1024 }
  0x1d   : > { %755 = vmatprep.subr.bf16.mxu0 %v754_v9  ;;  %305 = vperm.xlu1 %837, %v267_v15   ;;  %p845_p1 = scmp.lt.s32.totalorder %s1098_s24, %s843_s10  ;;  %p846_p2 = scmp.lt.s32.totalorder %s844_s11, %s838_s8 }
  0x1e   : > { %757 = vmatpush3.bf16.msra.mxu0 %v754_v9 }
  0x1f   : > { %759 = vmatprep.subr.bf16.mxu0 %v758_v11  ;;  %p847_p3 = por %p846_p2, %p845_p1 }
  0x20   : > { %448 = vperm.xlu0 %836, %v442_v18  }
  0x21   : > { %453 = vperm.xlu1 %837, %v443_v19   ;;  %p848_p5 = pnand %p847_p3, %p841_p0 }
  0x22   : > { %761 = vmatpush3.bf16.msra.mxu0 %v758_v11 }
  0x24   : > { %458 = vperm.xlu0 %836, %v444_v22  }
  0x25   : > { %721 = vmatmul.mubr.msk.f32.vlgmr.msra.gmra.mrb[0].mxu0 %vm308_vm0, %v253_v16  ;;  %463 = vperm.xlu1 %837, %v445_v23  }
  0x26   : > { %723 = vmatprep.mubr.msk.f32.mxu0 %vm308_vm0, %v254_v17 }
  0x29   : > { %724 = vmatmul.mubr.msk.f32.gmra.mrb[2].mxu0 %vm308_vm0, %v255_v20 }
  0x2a   : > { %726 = vmatprep.mubr.msk.f32.mxu0 %vm308_vm0, %v256_v21 }
  0x2d   : > { %727 = vmatmul.mubr.msk.f32.gmra.mrb[4].mxu0 %vm308_vm0, %v257_v24 }
  0x2e   : > { %729 = vmatprep.mubr.msk.f32.mxu0 %vm308_vm0, %v258_v25 }
  0x31   : > { %730 = vmatmul.mubr.msk.f32.gmra.mrb[6].mxu0 %vm308_vm0, %v259_v26 }
  0x8f   : > { %v271_v28 = vpop.permute.xlu0 %270 }
  0x90   : > { %v281_v29 = vpop.permute.xlu1 %280 }
  0x93   : > { %v276_v30 = vpop.permute.xlu0 %275 }
  0x94   : > { %v286_v31 = vpop.permute.xlu1 %285 }
  0x97   : > { %v291_v42 = vpop.permute.xlu0 %290 }
  0x98   : > { %v296_v40 = vpop.permute.xlu1 %295 }
  0x9b   : > { %v301_v51 = vpop.permute.xlu0 %300 }
  0x9c   : > { %v306_v48 = vpop.permute.xlu1 %305 }
  0x9f   : > { %v449_v60 = vpop.permute.xlu0 %448 }
  0xa0   : > { %v454_v59 = vpop.permute.xlu1 %453 }
  0xa3   : > { %v459_v3 = vpop.permute.xlu0 %458 }
  0xa4   : > { %v464_v1 = vpop.permute.xlu1 %463 }
  0xf8   : > { %v722_v32 = vpop.f32.mrb[0].mxu0 }
  0xf9   : > { %v405_v33 = vadd.f32 %v722_v32, %v276_v30  ;;  %v399_v34 = vpop.f32.mrb[1].mxu0 }
  0xfa   : > { %v400_v35 = vadd.f32 %v399_v34, %v271_v28 }
  0xfc   : > { %v725_v36 = vpop.f32.mrb[2].mxu0  ;;  %v762_v37 = vpack.c.bf16 %v405_v33, %v400_v35 }
  0xfd   : > { %v415_v38 = vadd.f32 %v725_v36, %v286_v31  ;;  %v409_v39 = vpop.f32.mrb[3].mxu0 }
  0xfe   : > { %v410_v41 = vadd.f32 %v409_v39, %v281_v29  ;;  %763 = vmatprep.subr.bf16.mxu1 %v762_v37 }
  0xff   : > { %765 = vmatpush3.bf16.msra.mxu1 %v762_v37 }
 0x100   : > { %v766_v43 = vpack.c.bf16 %v415_v38, %v410_v41  ;;  %v728_v44 = vpop.f32.mrb[4].mxu0 }
 0x101   : > { %v425_v45 = vadd.f32 %v728_v44, %v296_v40  ;;  %v419_v46 = vpop.f32.mrb[5].mxu0 }
 0x102   : > { %v420_v47 = vadd.f32 %v419_v46, %v291_v42  ;;  %767 = vmatprep.subr.bf16.mxu1 %v766_v43 }
 0x103   : > { %769 = vmatpush3.bf16.msra.mxu1 %v766_v43 }
 0x104   : > { %v770_v49 = vpack.c.bf16 %v425_v45, %v420_v47  ;;  %v731_v50 = vpop.f32.mrb[6].mxu0 }
 0x105   : > { %v435_v52 = vadd.f32 %v731_v50, %v306_v48  ;;  %v429_v53 = vpop.f32.mrb[7].mxu0 }
 0x106   : > { %v430_v54 = vadd.f32 %v429_v53, %v301_v51  ;;  %771 = vmatprep.subr.bf16.mxu1 %v770_v49 }
 0x107   : > { %773 = vmatpush3.bf16.msra.mxu1 %v770_v49 }
 0x108   : > { %v774_v55 = vpack.c.bf16 %v435_v52, %v430_v54 }
 0x10a   : > { %775 = vmatprep.subr.bf16.mxu1 %v774_v55 }
 0x10b   : > { %777 = vmatpush3.bf16.msra.mxu1 %v774_v55 }
 0x10e   : > { %749 = vmatmul.mubr.msk.f32.vlgmr.msra.gmra.mrb[0].mxu1 %vm466_vm1, %v439_v56 }
 0x10f   : > { %751 = vmatprep.mubr.msk.f32.mxu1 %vm466_vm1, %v440_v57 }
 0x112   : > { %752 = vmatmul.mubr.msk.f32.gmra.mrb[2].mxu1 %vm466_vm1, %v441_v58 }
 0x1e1   : > { %v750_v61 = vpop.f32.mrb[0].mxu1 }
 0x1e2   : > { %v551_v62 = vadd.f32 %v750_v61, %v454_v59  ;;  %v545_v63 = vpop.f32.mrb[1].mxu1 }
 0x1e3   : > { %v546_v0 = vadd.f32 %v545_v63, %v449_v60 }
 0x1e4   : > { %565 = vst [vmem:[%s239_s17 + $0x8] sm:$0xff] %v551_v62 }
 0x1e5   : > { %564 = vst [vmem:[%s239_s17] sm:$0xff] %v546_v0  ;;  %v753_v2 = vpop.f32.mrb[2].mxu1 }
 0x1e6   : > { %v561_v4 = vadd.f32 %v753_v2, %v464_v1  ;;  %v555_v5 = vpop.f32.mrb[3].mxu1 }
 0x1e7   : > { %v556_v6 = vadd.f32 %v555_v5, %v459_v3 }
 0x1e8   : > { %567 = vst [vmem:[%s239_s17 + $0x18] sm:$0xff] %v561_v4 }
 0x1e9   : > { %566 = vst [vmem:[%s239_s17 + $0x10] sm:$0xff] %v556_v6 }
 0x1ea   : > { %851 = shalt.err (!%p848_p5)
}
 0x1eb   : > { %s852_s12 = scalar_lea.hbm %s1103_s7, 512  ;;  %s856_s15 = scalar_lea.hbm %s1156_s5, 1024 }
 0x1ec   : > { %p853_p6 = scmp.ne.s32.totalorder %s1103_s7, %s852_s12  ;;  %p857_p10 = scmp.lt.u32.totalorder %s1103_s7, %s1156_s5 }
 0x1ed   : > { %p858_p11 = scmp.lt.u32.totalorder %s856_s15, %s852_s12  ;;  %p860_p13 = scmp.lt.u32.totalorder %s852_s12, %s1103_s7 }
 0x1ee   : > { %p854_p7 = pnand %p853_p6, %p992_p4 }
 0x1ef   : > { %p859_p12 = por %p858_p11, %p857_p10 }
 0x1f0   : > { %p855_p9 = pneg %p854_p7 }
 0x1f1   : > { %p861_p0 = por %p860_p13, %p859_p12 }
 0x1f3   : > { %p862_p1 = pnand %p861_p0, %p855_p9 }
 0x1f5   : > { %865 = shalt.err (!%p862_p1)
}
 0x1f6   : > { %s920_s25 = smov 128   ;;  %s921_s27 = smov 8  }
 0x1f7   : > { %778 = dma.vmem_to_hbm [thread:$0]  (%p992_p4), %s1098_s24, 512, %s1103_s7, %s1105_s21, %s920_s25, %s920_s25, %s921_s27  }
 0x1f8 PF: > { %p784_p2 = scmp.ge.s32.totalorder %s916_s23, 2  ;;  %s598_s29 = sand.u32 1, %s896_s18  }
 0x1f9   : > { %s599_s8 = scalar_lea.sflag [#allocation3], %s598_s29 }
 0x1fa   : > { %p781_p3 = pnand %p784_p2, %p999_p8 }
 0x1fc   : > { %891 = dma.done.wait (!%p781_p3), %s599_s8, 512  }
 0x1fd   : > { %893 = vsyncadd (!%p781_p3), %s599_s8, 4294966784  ;;  %s18_s23 = sadd.s32 1, %s916_s23   ;;  %s1159_s18 = smov %s900_s19 }
 0x1fe   : > { %p15_p5 = scmp.ge.s32.totalorder %s18_s23, 4   ;;  %s1160_s19 = smov %s904_s20 }
 0x1ff   : > { %s1161_s20 = smov %s1005_s6  ;;  %s1162_s21 = smov %s912_s22 }
 0x200   : > { %s1163_s22 = smov %s1165_s26  ;;  %17 = sbr.rel (!%p15_p5) target bundleno = 4 (0x4), region = 75 }
 0x207   :  { %604 = vsyncpa [#allocation3], 1 }
 0x208   :  { %606 = vsyncpa [#allocation3 + $0x1], 1 }

// kernel: tpu_custom_call.1
= control target key start
LH: loop header
LB: loop body
LE: loop exit
PB: predicated region body
PF: predicated region fallthrough
CT: control target
= control target key end

     0   :  { %10 = vsyncpa [#allocation3], 0  ;;  %s1151_s0 = inlined_call_operand.vmem [shape: f32[2,32,128], index: 0, kind: input, shape index: {}]   ;;  %s1152_s1 = inlined_call_operand.vmem [shape: f32[64,32], index: 1, kind: input, shape index: {}]   ;;  %s1153_s2 = inlined_call_operand.vmem [shape: f32[64,1], index: 2, kind: input, shape index: {}]   ;;  %s1154_s3 = inlined_call_operand.vmem [shape: f32[32,64], index: 3, kind: input, shape index: {}]   ;;  %s1155_s4 = inlined_call_operand.vmem [shape: f32[32,1], index: 4, kind: input, shape index: {}]   ;;  %s1156_s5 = inlined_call_operand.hbm [shape: f32[2,32,128], index: 5, kind: output, shape index: {}]  }
   0x1   :  { %12 = vsyncpa [#allocation3 + $0x1], 0  ;;  %s952_s18 = smov 0   ;;  %s954_s19 = smov 0  }
   0x2   :  { %s956_s20 = smov 0   ;;  %s958_s21 = smov 0  }
   0x3   :  { %s960_s22 = smov 0   ;;  %s962_s23 = smov 0  }
   0x4 LB: > { %s661_s24 = sadd.s32 4294967295, %s916_s23   ;;  %s662_s25 = sadd.s32 4294967294, %s916_s23   ;;  %s916_s23 = sphi %s962_s23, %s18_s23   ;;  %s912_s22 = sphi %s960_s22, %s1163_s22   ;;  %s908_s21 = sphi %s958_s21, %s1162_s21   ;;  %s904_s20 = sphi %s956_s20, %s1161_s20   ;;  %s900_s19 = sphi %s954_s19, %s1160_s19   ;;  %s896_s18 = sphi %s952_s18, %s1159_s18  }
   0x5   : > { %s30_s26 = sadd.s32 1, %s912_s22  ;;  %s151_s27 = sadd.s32 1, %s904_s20 }
   0x6   : > { %p32_p0 = scmp.ge.s32.totalorder %s30_s26, 2  ;;  %p161_p1 = scmp.ne.s32.totalorder %s904_s20, %s900_s19 }
   0x7   : > { %p162_p2 = scmp.eq.s32.totalorder %s661_s24, 1  ;;  %p167_p3 = scmp.ne.s32.totalorder %s900_s19, %s896_s18 }
   0x8   : > { %s1165_s26 = smov (%p32_p0, %s30_s26), 0  ;;  %p168_p5 = scmp.eq.s32.totalorder %s662_s25, 1 }
   0x9   : > { %p992_p4 = por %p162_p2, %p161_p1  ;;  %s146_s29 = ssub.s32 %s912_s22, %s1165_s26 }
   0xa   : > { %p665_p6 = scmp.ge.s32.totalorder %s916_s23, 1  ;;  %p149_p7 = scmp.eq.s32.totalorder %s146_s29, 0 }
   0xb   : > { %p999_p8 = por %p168_p5, %p167_p3  ;;  %p209_p9 = scmp.lt.s32.totalorder %s916_s23, 3 }
   0xc   : > { %s1005_s6 = scalar_select %p149_p7, %s904_s20, %s151_s27  }
   0xd   : > { %p210_p10 = pnand %p665_p6, %p209_p9 }
   0xe   : > { %p240_p11 = scmp.lt.s32.totalorder (!%p210_p10), %s908_s21, 1  ;;  %v252_v0 = vld [vmem:[%s1152_s1] sm:$0xff] (!%p210_p10)  ;;  %vm308_vm0 = vcmask (!%p210_p10), 261120   ;;  %v918_v1 = vmov (!%p210_p10), 0   ;;  %v262_v3 = vld [vmem:[%s1153_s2 + $0x10] sm:$0xff] (!%p210_p10)  ;;  %v261_v4 = vld [vmem:[%s1153_s2 + $0x8] sm:$0xff] (!%p210_p10) }
   0xf   : > { %213 = sbr.rel (%p210_p10) target bundleno = 504 (0x1f8), region = 40  ;;  %720 = vmatprep.mubr.msk.f32.mxu0 (!%p210_p10), %vm308_vm0, %v252_v0  ;;  %836 = vset.pattern.permute.xlu0 (!%p210_p10), %v918_v1  ;;  %v260_v2 = vld [vmem:[%s1153_s2] sm:$0xff] (!%p210_p10)  ;;  %v263_v5 = vld [vmem:[%s1153_s2 + $0x18] sm:$0xff] (!%p210_p10)  ;;  %v265_v13 = vld [vmem:[%s1153_s2 + $0x28] sm:$0xff] (!%p210_p10)  ;;  %vm466_vm1 = vcmask (!%p210_p10), 523264   ;;  %s237_s15 = sand.u32 (!%p210_p10), 1, %s900_s19  }
  0x10   : > { %837 = vset.pattern.permute.xlu1 (!%p210_p10), %v918_v1  ;;  %270 = vperm.xlu0 (!%p210_p10), %836, %v260_v2   ;;  %v264_v12 = vld [vmem:[%s1153_s2 + $0x20] sm:$0xff] (!%p210_p10)  ;;  %v266_v14 = vld [vmem:[%s1153_s2 + $0x30] sm:$0xff] (!%p210_p10)  ;;  %v267_v15 = vld [vmem:[%s1153_s2 + $0x38] sm:$0xff] (!%p210_p10)  ;;  %s666_s16 = sshll.u32 (!%p210_p10), %s237_s15, 5 }
  0x11   : > { %280 = vperm.xlu1 (!%p210_p10), %837, %v262_v3   ;;  %v253_v16 = vld [vmem:[%s1152_s1 + $0x8] sm:$0xff] (!%p210_p10)  ;;  %v254_v17 = vld [vmem:[%s1152_s1 + $0x10] sm:$0xff] (!%p210_p10)  ;;  %v442_v18 = vld [vmem:[%s1155_s4] sm:$0xff] (!%p210_p10)  ;;  %s239_s17 = scalar_lea.vmem (!%p210_p10), [#allocation2], %s666_s16 }
  0x12   : > { %v443_v19 = vld [vmem:[%s1155_s4 + $0x8] sm:$0xff] (!%p210_p10)  ;;  %v255_v20 = vld [vmem:[%s1152_s1 + $0x18] sm:$0xff] (!%p210_p10)  ;;  %v256_v21 = vld [vmem:[%s1152_s1 + $0x20] sm:$0xff] (!%p210_p10)  ;;  %s583_s24 = sshll.u32 (!%p210_p10), %s239_s17, 4  ;;  %s1098_s24 = int_to_ptr.vmem [resolvable:$true] %s583_s24 }
  0x13   : > { %v444_v22 = vld [vmem:[%s1155_s4 + $0x10] sm:$0xff] (!%p210_p10)  ;;  %v445_v23 = vld [vmem:[%s1155_s4 + $0x18] sm:$0xff] (!%p210_p10)  ;;  %v257_v24 = vld [vmem:[%s1152_s1 + $0x28] sm:$0xff] (!%p210_p10)  ;;  %s838_s8 = scalar_lea.vmem (!%p210_p10), %s1098_s24, 512 }
  0x14   : > { %275 = vperm.xlu0 (!%p210_p10), %836, %v261_v4   ;;  %v258_v25 = vld [vmem:[%s1152_s1 + $0x30] sm:$0xff] (!%p210_p10)  ;;  %v259_v26 = vld [vmem:[%s1152_s1 + $0x38] sm:$0xff] (!%p210_p10)  ;;  %v438_v27 = vld [vmem:[%s1154_s3] sm:$0xff] (!%p210_p10)  ;;  %p839_p12 = scmp.ne.s32.totalorder (!%p210_p10), %s1098_s24, %s838_s8 }
  0x15   : > { %285 = vperm.xlu1 (!%p210_p10), %837, %v263_v5   ;;  %748 = vmatprep.mubr.msk.f32.mxu1 (!%p210_p10), %vm466_vm1, %v438_v27  ;;  %v439_v56 = vld [vmem:[%s1154_s3 + $0x8] sm:$0xff] (!%p210_p10)  ;;  %v440_v57 = vld [vmem:[%s1154_s3 + $0x10] sm:$0xff] (!%p210_p10)  ;;  %v441_v58 = vld [vmem:[%s1154_s3 + $0x18] sm:$0xff] (!%p210_p10) }
  0x16   : > { %s241_s9 = scalar_select %p240_p11, %s908_s21, 1 }
  0x17   : > { %p840_p13 = pnand %p839_p12, %p992_p4 }
  0x18   : > { %s686_s14 = sshll.u32 %s241_s9, 5  ;;  %290 = vperm.xlu0 %836, %v264_v12   ;;  %s919_s9 = smov [#allocation2]  }
  0x19   : > { %s247_s25 = scalar_lea.vmem %s1151_s0, %s686_s14  ;;  %295 = vperm.xlu1 %837, %v265_v13   ;;  %p841_p0 = pneg %p840_p13 }
  0x1a   : > { %v248_v6 = vld [vmem:[%s247_s25] sm:$0xff]  ;;  %v249_v7 = vld [vmem:[%s247_s25 + $0x8] sm:$0xff]  ;;  %v250_v8 = vld [vmem:[%s247_s25 + $0x10] sm:$0xff]  ;;  %s842_s10 = sshll.u32 %s919_s9, 4  ;;  %s843_s10 = int_to_ptr.vmem [resolvable:$false] %s842_s10 }
  0x1b   : > { %v754_v9 = vpack.c.bf16 %v249_v7, %v248_v6  ;;  %v251_v10 = vld [vmem:[%s247_s25 + $0x18] sm:$0xff]  ;;  %s687_s25 = sshll.u32 %s908_s21, 9  ;;  %s1105_s21 = scalar_lea.sflag [#allocation3], %s237_s15 }
  0x1c   : > { %v758_v11 = vpack.c.bf16 %v251_v10, %v250_v8  ;;  %300 = vperm.xlu0 %836, %v266_v14   ;;  %s1103_s7 = scalar_lea.hbm %s1156_s5, %s687_s25  ;;  %s844_s11 = scalar_lea.vmem %s843_s10, 1024 }
  0x1d   : > { %755 = vmatprep.subr.bf16.mxu0 %v754_v9  ;;  %305 = vperm.xlu1 %837, %v267_v15   ;;  %p845_p1 = scmp.lt.s32.totalorder %s1098_s24, %s843_s10  ;;  %p846_p2 = scmp.lt.s32.totalorder %s844_s11, %s838_s8 }
  0x1e   : > { %757 = vmatpush3.bf16.msra.mxu0 %v754_v9 }
  0x1f   : > { %759 = vmatprep.subr.bf16.mxu0 %v758_v11  ;;  %p847_p3 = por %p846_p2, %p845_p1 }
  0x20   : > { %448 = vperm.xlu0 %836, %v442_v18  }
  0x21   : > { %453 = vperm.xlu1 %837, %v443_v19   ;;  %p848_p5 = pnand %p847_p3, %p841_p0 }
  0x22   : > { %761 = vmatpush3.bf16.msra.mxu0 %v758_v11 }
  0x24   : > { %458 = vperm.xlu0 %836, %v444_v22  }
  0x25   : > { %721 = vmatmul.mubr.msk.f32.vlgmr.msra.gmra.mrb[0].mxu0 %vm308_vm0, %v253_v16  ;;  %463 = vperm.xlu1 %837, %v445_v23  }
  0x26   : > { %723 = vmatprep.mubr.msk.f32.mxu0 %vm308_vm0, %v254_v17 }
  0x29   : > { %724 = vmatmul.mubr.msk.f32.gmra.mrb[2].mxu0 %vm308_vm0, %v255_v20 }
  0x2a   : > { %726 = vmatprep.mubr.msk.f32.mxu0 %vm308_vm0, %v256_v21 }
  0x2d   : > { %727 = vmatmul.mubr.msk.f32.gmra.mrb[4].mxu0 %vm308_vm0, %v257_v24 }
  0x2e   : > { %729 = vmatprep.mubr.msk.f32.mxu0 %vm308_vm0, %v258_v25 }
  0x31   : > { %730 = vmatmul.mubr.msk.f32.gmra.mrb[6].mxu0 %vm308_vm0, %v259_v26 }
  0x8f   : > { %v271_v28 = vpop.permute.xlu0 %270 }
  0x90   : > { %v281_v29 = vpop.permute.xlu1 %280 }
  0x93   : > { %v276_v30 = vpop.permute.xlu0 %275 }
  0x94   : > { %v286_v31 = vpop.permute.xlu1 %285 }
  0x97   : > { %v291_v42 = vpop.permute.xlu0 %290 }
  0x98   : > { %v296_v40 = vpop.permute.xlu1 %295 }
  0x9b   : > { %v301_v51 = vpop.permute.xlu0 %300 }
  0x9c   : > { %v306_v48 = vpop.permute.xlu1 %305 }
  0x9f   : > { %v449_v60 = vpop.permute.xlu0 %448 }
  0xa0   : > { %v454_v59 = vpop.permute.xlu1 %453 }
  0xa3   : > { %v459_v3 = vpop.permute.xlu0 %458 }
  0xa4   : > { %v464_v1 = vpop.permute.xlu1 %463 }
  0xf8   : > { %v722_v32 = vpop.f32.mrb[0].mxu0 }
  0xf9   : > { %v405_v33 = vadd.f32 %v722_v32, %v276_v30  ;;  %v399_v34 = vpop.f32.mrb[1].mxu0 }
  0xfa   : > { %v400_v35 = vadd.f32 %v399_v34, %v271_v28 }
  0xfc   : > { %v725_v36 = vpop.f32.mrb[2].mxu0  ;;  %v762_v37 = vpack.c.bf16 %v405_v33, %v400_v35 }
  0xfd   : > { %v415_v38 = vadd.f32 %v725_v36, %v286_v31  ;;  %v409_v39 = vpop.f32.mrb[3].mxu0 }
  0xfe   : > { %v410_v41 = vadd.f32 %v409_v39, %v281_v29  ;;  %763 = vmatprep.subr.bf16.mxu1 %v762_v37 }
  0xff   : > { %765 = vmatpush3.bf16.msra.mxu1 %v762_v37 }
 0x100   : > { %v766_v43 = vpack.c.bf16 %v415_v38, %v410_v41  ;;  %v728_v44 = vpop.f32.mrb[4].mxu0 }
 0x101   : > { %v425_v45 = vadd.f32 %v728_v44, %v296_v40  ;;  %v419_v46 = vpop.f32.mrb[5].mxu0 }
 0x102   : > { %v420_v47 = vadd.f32 %v419_v46, %v291_v42  ;;  %767 = vmatprep.subr.bf16.mxu1 %v766_v43 }
 0x103   : > { %769 = vmatpush3.bf16.msra.mxu1 %v766_v43 }
 0x104   : > { %v770_v49 = vpack.c.bf16 %v425_v45, %v420_v47  ;;  %v731_v50 = vpop.f32.mrb[6].mxu0 }
 0x105   : > { %v435_v52 = vadd.f32 %v731_v50, %v306_v48  ;;  %v429_v53 = vpop.f32.mrb[7].mxu0 }
 0x106   : > { %v430_v54 = vadd.f32 %v429_v53, %v301_v51  ;;  %771 = vmatprep.subr.bf16.mxu1 %v770_v49 }
 0x107   : > { %773 = vmatpush3.bf16.msra.mxu1 %v770_v49 }
 0x108   : > { %v774_v55 = vpack.c.bf16 %v435_v52, %v430_v54 }
 0x10a   : > { %775 = vmatprep.subr.bf16.mxu1 %v774_v55 }
 0x10b   : > { %777 = vmatpush3.bf16.msra.mxu1 %v774_v55 }
 0x10e   : > { %749 = vmatmul.mubr.msk.f32.vlgmr.msra.gmra.mrb[0].mxu1 %vm466_vm1, %v439_v56 }
 0x10f   : > { %751 = vmatprep.mubr.msk.f32.mxu1 %vm466_vm1, %v440_v57 }
 0x112   : > { %752 = vmatmul.mubr.msk.f32.gmra.mrb[2].mxu1 %vm466_vm1, %v441_v58 }
 0x1e1   : > { %v750_v61 = vpop.f32.mrb[0].mxu1 }
 0x1e2   : > { %v551_v62 = vadd.f32 %v750_v61, %v454_v59  ;;  %v545_v63 = vpop.f32.mrb[1].mxu1 }
 0x1e3   : > { %v546_v0 = vadd.f32 %v545_v63, %v449_v60 }
 0x1e4   : > { %565 = vst [vmem:[%s239_s17 + $0x8] sm:$0xff] %v551_v62 }
 0x1e5   : > { %564 = vst [vmem:[%s239_s17] sm:$0xff] %v546_v0  ;;  %v753_v2 = vpop.f32.mrb[2].mxu1 }
 0x1e6   : > { %v561_v4 = vadd.f32 %v753_v2, %v464_v1  ;;  %v555_v5 = vpop.f32.mrb[3].mxu1 }
 0x1e7   : > { %v556_v6 = vadd.f32 %v555_v5, %v459_v3 }
 0x1e8   : > { %567 = vst [vmem:[%s239_s17 + $0x18] sm:$0xff] %v561_v4 }
 0x1e9   : > { %566 = vst [vmem:[%s239_s17 + $0x10] sm:$0xff] %v556_v6 }
 0x1ea   : > { %851 = shalt.err (!%p848_p5)
}
 0x1eb   : > { %s852_s12 = scalar_lea.hbm %s1103_s7, 512  ;;  %s856_s15 = scalar_lea.hbm %s1156_s5, 1024 }
 0x1ec   : > { %p853_p6 = scmp.ne.s32.totalorder %s1103_s7, %s852_s12  ;;  %p857_p10 = scmp.lt.u32.totalorder %s1103_s7, %s1156_s5 }
 0x1ed   : > { %p858_p11 = scmp.lt.u32.totalorder %s856_s15, %s852_s12  ;;  %p860_p13 = scmp.lt.u32.totalorder %s852_s12, %s1103_s7 }
 0x1ee   : > { %p854_p7 = pnand %p853_p6, %p992_p4 }
 0x1ef   : > { %p859_p12 = por %p858_p11, %p857_p10 }
 0x1f0   : > { %p855_p9 = pneg %p854_p7 }
 0x1f1   : > { %p861_p0 = por %p860_p13, %p859_p12 }
 0x1f3   : > { %p862_p1 = pnand %p861_p0, %p855_p9 }
 0x1f5   : > { %865 = shalt.err (!%p862_p1)
}
 0x1f6   : > { %s920_s25 = smov 128   ;;  %s921_s27 = smov 8  }
 0x1f7   : > { %778 = dma.vmem_to_hbm [thread:$0]  (%p992_p4), %s1098_s24, 512, %s1103_s7, %s1105_s21, %s920_s25, %s920_s25, %s921_s27  }
 0x1f8 PF: > { %p784_p2 = scmp.ge.s32.totalorder %s916_s23, 2  ;;  %s598_s29 = sand.u32 1, %s896_s18  }
 0x1f9   : > { %s599_s8 = scalar_lea.sflag [#allocation3], %s598_s29 }
 0x1fa   : > { %p781_p3 = pnand %p784_p2, %p999_p8 }
 0x1fc   : > { %891 = dma.done.wait (!%p781_p3), %s599_s8, 512  }
 0x1fd   : > { %893 = vsyncadd (!%p781_p3), %s599_s8, 4294966784  ;;  %s18_s23 = sadd.s32 1, %s916_s23   ;;  %s1159_s18 = smov %s900_s19 }
 0x1fe   : > { %p15_p5 = scmp.ge.s32.totalorder %s18_s23, 4   ;;  %s1160_s19 = smov %s904_s20 }
 0x1ff   : > { %s1161_s20 = smov %s1005_s6  ;;  %s1162_s21 = smov %s912_s22 }
 0x200   : > { %s1163_s22 = smov %s1165_s26  ;;  %17 = sbr.rel (!%p15_p5) target bundleno = 4 (0x4), region = 75 }
 0x207   :  { %604 = vsyncpa [#allocation3], 1 }
 0x208   :  { %606 = vsyncpa [#allocation3 + $0x1], 1 }

</bundles_post_ra>
